<compile_context>
chip_gen: v7x
topology: tpu7x:2x2x1
jax: 0.10.0
libtpu: 0.0.40
codegen_flags: <defaults>
</compile_context>

<pallas_src>
import functools

import jax
import jax.numpy as jnp
from jax import lax
from jax.experimental import pallas as pl
from jax.experimental.pallas import tpu as pltpu


def _focal_pointwise(x, t, *, gamma, alpha):
    """Per-pixel focal loss.

    x: (C, *S) float32 logits, class axis leading.
    t: (1, *S) int32 target class ids.
    Returns (1, *S) float32 loss.
    """
    C = x.shape[0]

    # Numerically stable log-softmax over the (leading) class axis.
    m = jnp.max(x, axis=0, keepdims=True)
    z = x - m
    ez = jnp.exp(z)
    sumexp = jnp.sum(ez, axis=0, keepdims=True)

    # Gather z / exp(z) at the target class with an unrolled per-class select
    # (C is small).  Avoids captured array constants and cross-lane gathers.
    z_t = jnp.zeros_like(sumexp)
    ez_t = jnp.zeros_like(sumexp)
    for c in range(C):
        sel = t == c
        z_t = jnp.where(sel, z[c:c + 1], z_t)
        ez_t = jnp.where(sel, ez[c:c + 1], ez_t)

    logpt = z_t - jnp.log(sumexp)                       # log p_t (exact)
    # p_t via approximate reciprocal (single EUP push) instead of an f32 divide.
    pt = ez_t * pl.reciprocal(sumexp, approx=True)

    if alpha is not None:
        at = jnp.zeros_like(sumexp)
        for c in range(C):
            at = jnp.where(t == c, float(alpha[c]), at)
        logpt = logpt * at

    # Focal factor; clamp (pt may round slightly above 1 -> NaN under a
    # fractional power).  Integer gamma (the common case, gamma=2) uses
    # repeated multiplies instead of jnp.power (= exp(log(x)) on the EUP).
    omp = jnp.maximum(1.0 - pt, 0.0)
    g = float(gamma)
    if g.is_integer() and 0 <= int(g) <= 8:
        ig = int(g)
        focal = jnp.ones_like(omp) if ig == 0 else omp
        for _ in range(max(ig - 1, 0)):
            focal = focal * omp
    else:
        focal = jnp.power(omp, g)

    return -focal * logpt


def _focal_kernel_4d(x_ref, t_ref, out_ref, *, gamma, alpha, n_rows,
                     rows_tile, need_mask):
    """HW % 128 == 0 path.  x_ref: (1, C, rows_tile, 128); t_ref: (1, 1, rows_tile, 128)."""
    t_idx = pl.program_id(1)

    @pl.when(t_idx == 0)
    def _():
        out_ref[...] = jnp.zeros_like(out_ref)

    x = x_ref[0].astype(jnp.float32)           # (C, rows_tile, 128)
    t = t_ref[0]                               # (1, rows_tile, 128) int32
    loss = _focal_pointwise(x, t, gamma=gamma, alpha=alpha)

    if need_mask:
        # Ragged last tile: zero the rows past HW//128 before summing.
        # (Garbage in padded rows is lane/row-local; the select discards it.)
        row = lax.broadcasted_iota(jnp.int32, loss.shape, 1)
        valid = row + t_idx * rows_tile < n_rows
        loss = jnp.where(valid, loss, 0.0)

    out_ref[...] += jnp.sum(loss)


def _focal_kernel_3d(x_ref, t_ref, out_ref, *, gamma, alpha, hw, col_tile):
    """Ragged-HW fallback.  x_ref: (1, C, col_tile); t_ref: (1, 1, col_tile)."""
    t_idx = pl.program_id(1)

    @pl.when(t_idx == 0)
    def _():
        out_ref[...] = jnp.zeros_like(out_ref)

    x = x_ref[0].astype(jnp.float32)           # (C, col_tile)
    t = t_ref[0]                               # (1, col_tile) int32
    loss = _focal_pointwise(x, t, gamma=gamma, alpha=alpha)

    lane = lax.broadcasted_iota(jnp.int32, loss.shape, 1)
    valid = lane + t_idx * col_tile < hw
    loss = jnp.where(valid, loss, 0.0)

    out_ref[...] += jnp.sum(loss)


def focal_loss(logits, target, *, gamma=2.0, alpha=None, size_average=True,
               tile_bytes=2 * 1024 * 1024):
    """Focal loss matching PyTorch FocalLoss.forward for NCHW logits.

    logits: (N, C, H, W) float logits (f32 or bf16, consumed natively).
    target: (N, H, W) integer class ids in [0, C).
    alpha:  None, a per-class list/tuple, or a scalar (-> [alpha, 1 - alpha]).
    tile_bytes: approx input HBM bytes per grid step.  ~1-3 MiB keeps all
        generations near the HBM roofline; v7x benefits from the upper end,
        v5e stays safe because vmem_limit_bytes is raised below.
    """
    N, C, H, W = logits.shape
    HW = H * W

    if alpha is not None:
        if isinstance(alpha, (float, int)):
            alpha = (float(alpha), 1.0 - float(alpha))   # PyTorch scalar case (C==2)
        alpha = tuple(float(a) for a in alpha)
        assert len(alpha) == C, "alpha must have one weight per class"

    # TODO(synk): int16/int8 targets could be consumed natively too (needs
    # 16/32-row tile alignment); cast to int32 for now (no-op for int32 input).
    tgt = target.astype(jnp.int32)
    x_item = logits.dtype.itemsize
    bytes_per_px = C * x_item + 4                      # logits + int32 target

    common = dict(gamma=float(gamma), alpha=alpha)

    if HW % 128 == 0:
        # Lane-packed layout: spatial -> (rows, 128); class axis leading so the
        # class reduction is elementwise over full vregs (no XLU sublane reduce).
        n_rows = HW // 128
        rows_budget = max(1, int(tile_bytes) // (bytes_per_px * 128))
        if rows_budget >= n_rows:
            rows_tile = n_rows
        else:
            rows_tile = min(max(8, (rows_budget // 32) * 32), n_rows)
        grid = (N, pl.cdiv(n_rows, rows_tile))
        kernel = functools.partial(
            _focal_kernel_4d, n_rows=n_rows, rows_tile=rows_tile,
            need_mask=(n_rows % rows_tile != 0), **common)
        x_in = logits.reshape(N, C, n_rows, 128)       # free, contiguous
        t_in = tgt.reshape(N, 1, n_rows, 128)
        in_specs = [
            pl.BlockSpec((1, C, rows_tile, 128), lambda n, t: (n, 0, t, 0)),
            pl.BlockSpec((1, 1, rows_tile, 128), lambda n, t: (n, 0, t, 0)),
        ]
    else:
        # Ragged H*W fallback: (N, C, HW) with an in-kernel validity mask.
        hw_pad = pl.cdiv(HW, 128) * 128
        col_tile = max(128, (int(tile_bytes) // bytes_per_px) // 128 * 128)
        col_tile = min(col_tile, hw_pad)
        grid = (N, pl.cdiv(HW, col_tile))
        kernel = functools.partial(
            _focal_kernel_3d, hw=HW, col_tile=col_tile, **common)
        x_in = logits.reshape(N, C, HW)
        t_in = tgt.reshape(N, 1, HW)
        in_specs = [
            pl.BlockSpec((1, C, col_tile), lambda n, t: (n, 0, t)),
            pl.BlockSpec((1, 1, col_tile), lambda n, t: (n, 0, t)),
        ]

    partials = pl.pallas_call(
        kernel,
        out_shape=jax.ShapeDtypeStruct((N, 1, 1), jnp.float32),
        grid_spec=pltpu.PrefetchScalarGridSpec(
            num_scalar_prefetch=0,
            grid=grid,
            in_specs=in_specs,
            # Per-n accumulator block: resident across the spatial (reduction)
            # axis -> one HBM writeback per batch row.
            out_specs=pl.BlockSpec((1, 1, 1), lambda n, t: (n, 0, 0)),
        ),
        compiler_params=pltpu.CompilerParams(
            dimension_semantics=("parallel", "arbitrary"),
            vmem_limit_bytes=32 * 1024 * 1024),
    )(x_in, t_in)

    total = jnp.sum(partials)
    if size_average:
        return total / (N * HW)
    return total


def _reference_focal_loss(logits, target, gamma, alpha, size_average):
    N, C, H, W = logits.shape
    x = jnp.transpose(logits.astype(jnp.float32), (0, 2, 3, 1)).reshape(-1, C)
    t = target.reshape(-1)
    logp = jax.nn.log_softmax(x, axis=1)
    logpt = jnp.take_along_axis(logp, t[:, None], axis=1)[:, 0]
    pt = jnp.exp(logpt)
    if alpha is not None:
        if isinstance(alpha, (float, int)):
            alpha = (float(alpha), 1.0 - float(alpha))
        a = jnp.asarray(alpha, dtype=jnp.float32)
        logpt = logpt * a[t]
    loss = -1.0 * (1.0 - pt) ** gamma * logpt
    return loss.mean() if size_average else loss.sum()


if __name__ == "__main__":
    key = jax.random.PRNGKey(0)
    ks = jax.random.split(key, 6)

    def check(out, ref, rtol, atol, name):
        out = jax.block_until_ready(out)
        assert jnp.allclose(out, ref, rtol=rtol, atol=atol), (name, out, ref)

    # Case 1: gamma=2, per-class alpha, mean reduction (HW % 128 == 0 path).
    N, C, H, W = 2, 4, 16, 16
    logits = jax.random.normal(ks[0], (N, C, H, W), dtype=jnp.float32)
    target = jax.random.randint(ks[1], (N, H, W), 0, C, dtype=jnp.int32)
    alpha = [0.1, 0.2, 0.3, 0.4]
    out = focal_loss(logits, target, gamma=2.0, alpha=alpha, size_average=True)
    check(out, _reference_focal_loss(logits, target, 2.0, alpha, True),
          2e-3, 1e-6, "case1")

    # Case 2: alpha=None, sum reduction.
    out = focal_loss(logits, target, gamma=2.0, alpha=None, size_average=False)
    check(out, _reference_focal_loss(logits, target, 2.0, None, False),
          2e-3, 1e-5, "case2")

    # Case 3: ragged H*W (not a multiple of 128), fractional gamma, multiple
    # spatial tiles (tiny tile_bytes) -> masked 3D path + accumulation.
    H3, W3 = 20, 20
    logits3 = jax.random.normal(ks[2], (N, C, H3, W3), dtype=jnp.float32)
    target3 = jax.random.randint(ks[3], (N, H3, W3), 0, C, dtype=jnp.int32)
    out = focal_loss(logits3, target3, gamma=1.5, alpha=None,
                     size_average=True, tile_bytes=512)
    check(out, _reference_focal_loss(logits3, target3, 1.5, None, True),
          2e-3, 1e-6, "case3")

    # Case 4: bf16 logits consumed natively (upcast in-kernel).
    logits_bf16 = logits.astype(jnp.bfloat16)
    out = focal_loss(logits_bf16, target, gamma=2.0, alpha=alpha,
                     size_average=True)
    check(out, _reference_focal_loss(logits_bf16, target, 2.0, alpha, True),
          2e-2, 1e-4, "case4")

    # Case 5: HW % 128 == 0 but rows not divisible by rows_tile -> 4D masked
    # path with multi-tile accumulation across the "arbitrary" spatial axis.
    H5, W5 = 48, 32
    logits5 = jax.random.normal(ks[4], (N, C, H5, W5), dtype=jnp.float32)
    target5 = jax.random.randint(ks[5], (N, H5, W5), 0, C, dtype=jnp.int32)
    out = focal_loss(logits5, target5, gamma=2.0, alpha=alpha,
                     size_average=False, tile_bytes=4096)
    check(out, _reference_focal_loss(logits5, target5, 2.0, alpha, False),
          2e-3, 1e-4, "case5")

    print("KERNEL_OK")
</pallas_src>

<mosaic_0001>
module attributes {stable_mosaic.version = 11 : i64} {
  func.func @_focal_kernel_4d(%arg0: i32, %arg1: i32, %arg2: memref<1x4x2x128xf32, #tpu.memory_space<vmem>>, %arg3: memref<1x1x2x128xi32, #tpu.memory_space<vmem>>, %arg4: memref<1x1x1xf32, #tpu.memory_space<vmem>>) attributes {dimension_semantics = [#tpu.dimension_semantics<parallel>, #tpu.dimension_semantics<arbitrary>], iteration_bounds = array<i64: 2, 1>, scalar_prefetch = 0 : i64, scratch_operands = 0 : i64, tpu.core_type = #tpu.core_type<tc>, window_params = [{transform_indices = @transform_0, window_bounds = array<i64: 1, 4, 2, 128>}, {transform_indices = @transform_1, window_bounds = array<i64: 1, 1, 2, 128>}, {transform_indices = @transform_2, window_bounds = array<i64: 1, 1, 1>}]} {
    %c0_i32 = arith.constant 0 : i32
    %0 = arith.cmpi eq, %arg1, %c0_i32 : i32
    %1 = arith.extui %0 : i1 to i32
    %c0_i32_0 = arith.constant 0 : i32
    %2 = arith.cmpi ne, %1, %c0_i32_0 : i32
    scf.if %2 {
      %cst_31 = arith.constant 0.000000e+00 : f32
      %78 = vector.broadcast %cst_31 : f32 to vector<1x1x1xf32>
      %c0_32 = arith.constant 0 : index
      %c0_33 = arith.constant 0 : index
      %c0_34 = arith.constant 0 : index
      %79 = vector.load %arg4[%c0_32, %c0_33, %c0_34] : memref<1x1x1xf32, #tpu.memory_space<vmem>>, vector<1x1x1xf32>
      tpu.vector_store %arg4[%c0_32, %c0_33, %c0_34], %78 {strides = array<i32>} : memref<1x1x1xf32, #tpu.memory_space<vmem>>, vector<1x1x1xf32>,
    } else {
    }
    %c0 = arith.constant 0 : index
    %c0_1 = arith.constant 0 : index
    %c0_2 = arith.constant 0 : index
    %c0_3 = arith.constant 0 : index
    %3 = vector.load %arg2[%c0, %c0_1, %c0_2, %c0_3] : memref<1x4x2x128xf32, #tpu.memory_space<vmem>>, vector<1x4x2x128xf32>
    %4 = vector.shape_cast %3 : vector<1x4x2x128xf32> to vector<4x2x128xf32>
    %c0_4 = arith.constant 0 : index
    %c0_5 = arith.constant 0 : index
    %c0_6 = arith.constant 0 : index
    %c0_7 = arith.constant 0 : index
    %5 = vector.load %arg3[%c0_4, %c0_5, %c0_6, %c0_7] : memref<1x1x2x128xi32, #tpu.memory_space<vmem>>, vector<1x1x2x128xi32>
    %6 = vector.shape_cast %5 : vector<1x1x2x128xi32> to vector<1x2x128xi32>
    %cst = arith.constant dense<0xFF800000> : vector<2x128xf32>
    %7 = vector.multi_reduction <maximumf>, %4, %cst [0] : vector<4x2x128xf32> to vector<2x128xf32>
    %8 = vector.shape_cast %7 : vector<2x128xf32> to vector<1x2x128xf32>
    %9 = vector.broadcast %8 : vector<1x2x128xf32> to vector<4x2x128xf32>
    %10 = arith.subf %4, %9 : vector<4x2x128xf32>
    %11 = math.exp %10 : vector<4x2x128xf32>
    %cst_8 = arith.constant dense<0.000000e+00> : vector<2x128xf32>
    %12 = vector.multi_reduction <add>, %11, %cst_8 [0] : vector<4x2x128xf32> to vector<2x128xf32>
    %13 = vector.shape_cast %12 : vector<2x128xf32> to vector<1x2x128xf32>
    %cst_9 = arith.constant 0.000000e+00 : f32
    %14 = vector.broadcast %cst_9 : f32 to vector<1x2x128xf32>
    %cst_10 = arith.constant 0.000000e+00 : f32
    %15 = vector.broadcast %cst_10 : f32 to vector<1x2x128xf32>
    %c0_i32_11 = arith.constant 0 : i32
    %16 = vector.broadcast %c0_i32_11 : i32 to vector<1x2x128xi32>
    %17 = arith.cmpi eq, %6, %16 : vector<1x2x128xi32>
    %18 = vector.extract_strided_slice %10 {offsets = [0, 0, 0], sizes = [1, 2, 128], strides = [1, 1, 1]} : vector<4x2x128xf32> to vector<1x2x128xf32>
    %19 = arith.select %17, %18, %14 : vector<1x2x128xi1>, vector<1x2x128xf32>
    %20 = vector.extract_strided_slice %11 {offsets = [0, 0, 0], sizes = [1, 2, 128], strides = [1, 1, 1]} : vector<4x2x128xf32> to vector<1x2x128xf32>
    %21 = arith.select %17, %20, %15 : vector<1x2x128xi1>, vector<1x2x128xf32>
    %c1_i32 = arith.constant 1 : i32
    %22 = vector.broadcast %c1_i32 : i32 to vector<1x2x128xi32>
    %23 = arith.cmpi eq, %6, %22 : vector<1x2x128xi32>
    %24 = vector.extract_strided_slice %10 {offsets = [1, 0, 0], sizes = [1, 2, 128], strides = [1, 1, 1]} : vector<4x2x128xf32> to vector<1x2x128xf32>
    %25 = arith.select %23, %24, %19 : vector<1x2x128xi1>, vector<1x2x128xf32>
    %26 = vector.extract_strided_slice %11 {offsets = [1, 0, 0], sizes = [1, 2, 128], strides = [1, 1, 1]} : vector<4x2x128xf32> to vector<1x2x128xf32>
    %27 = arith.select %23, %26, %21 : vector<1x2x128xi1>, vector<1x2x128xf32>
    %c2_i32 = arith.constant 2 : i32
    %28 = vector.broadcast %c2_i32 : i32 to vector<1x2x128xi32>
    %29 = arith.cmpi eq, %6, %28 : vector<1x2x128xi32>
    %30 = vector.extract_strided_slice %10 {offsets = [2, 0, 0], sizes = [1, 2, 128], strides = [1, 1, 1]} : vector<4x2x128xf32> to vector<1x2x128xf32>
    %31 = arith.select %29, %30, %25 : vector<1x2x128xi1>, vector<1x2x128xf32>
    %32 = vector.extract_strided_slice %11 {offsets = [2, 0, 0], sizes = [1, 2, 128], strides = [1, 1, 1]} : vector<4x2x128xf32> to vector<1x2x128xf32>
    %33 = arith.select %29, %32, %27 : vector<1x2x128xi1>, vector<1x2x128xf32>
    %c3_i32 = arith.constant 3 : i32
    %34 = vector.broadcast %c3_i32 : i32 to vector<1x2x128xi32>
    %35 = arith.cmpi eq, %6, %34 : vector<1x2x128xi32>
    %36 = vector.extract_strided_slice %10 {offsets = [3, 0, 0], sizes = [1, 2, 128], strides = [1, 1, 1]} : vector<4x2x128xf32> to vector<1x2x128xf32>
    %37 = arith.select %35, %36, %31 : vector<1x2x128xi1>, vector<1x2x128xf32>
    %38 = vector.extract_strided_slice %11 {offsets = [3, 0, 0], sizes = [1, 2, 128], strides = [1, 1, 1]} : vector<4x2x128xf32> to vector<1x2x128xf32>
    %39 = arith.select %35, %38, %33 : vector<1x2x128xi1>, vector<1x2x128xf32>
    %40 = math.log %13 : vector<1x2x128xf32>
    %41 = arith.subf %37, %40 : vector<1x2x128xf32>
    %42 = tpu.reciprocal %13 {approx = true} : vector<1x2x128xf32> -> vector<1x2x128xf32>
    %43 = arith.mulf %39, %42 : vector<1x2x128xf32>
    %cst_12 = arith.constant 0.000000e+00 : f32
    %44 = vector.broadcast %cst_12 : f32 to vector<1x2x128xf32>
    %c0_i32_13 = arith.constant 0 : i32
    %45 = vector.broadcast %c0_i32_13 : i32 to vector<1x2x128xi32>
    %46 = arith.cmpi eq, %6, %45 : vector<1x2x128xi32>
    %cst_14 = arith.constant 1.000000e-01 : f32
    %47 = vector.broadcast %cst_14 : f32 to vector<1x2x128xf32>
    %48 = arith.select %46, %47, %44 : vector<1x2x128xi1>, vector<1x2x128xf32>
    %c1_i32_15 = arith.constant 1 : i32
    %49 = vector.broadcast %c1_i32_15 : i32 to vector<1x2x128xi32>
    %50 = arith.cmpi eq, %6, %49 : vector<1x2x128xi32>
    %cst_16 = arith.constant 2.000000e-01 : f32
    %51 = vector.broadcast %cst_16 : f32 to vector<1x2x128xf32>
    %52 = arith.select %50, %51, %48 : vector<1x2x128xi1>, vector<1x2x128xf32>
    %c2_i32_17 = arith.constant 2 : i32
    %53 = vector.broadcast %c2_i32_17 : i32 to vector<1x2x128xi32>
    %54 = arith.cmpi eq, %6, %53 : vector<1x2x128xi32>
    %cst_18 = arith.constant 3.000000e-01 : f32
    %55 = vector.broadcast %cst_18 : f32 to vector<1x2x128xf32>
    %56 = arith.select %54, %55, %52 : vector<1x2x128xi1>, vector<1x2x128xf32>
    %c3_i32_19 = arith.constant 3 : i32
    %57 = vector.broadcast %c3_i32_19 : i32 to vector<1x2x128xi32>
    %58 = arith.cmpi eq, %6, %57 : vector<1x2x128xi32>
    %cst_20 = arith.constant 4.000000e-01 : f32
    %59 = vector.broadcast %cst_20 : f32 to vector<1x2x128xf32>
    %60 = arith.select %58, %59, %56 : vector<1x2x128xi1>, vector<1x2x128xf32>
    %61 = arith.mulf %41, %60 : vector<1x2x128xf32>
    %cst_21 = arith.constant 1.000000e+00 : f32
    %62 = vector.broadcast %cst_21 : f32 to vector<1x2x128xf32>
    %63 = arith.subf %62, %43 : vector<1x2x128xf32>
    %cst_22 = arith.constant 0.000000e+00 : f32
    %64 = vector.broadcast %cst_22 : f32 to vector<1x2x128xf32>
    %65 = arith.maximumf %63, %64 : vector<1x2x128xf32>
    %66 = arith.mulf %65, %65 : vector<1x2x128xf32>
    %cst_23 = arith.constant 0.000000e+00 : f32
    %67 = vector.broadcast %cst_23 : f32 to vector<1x2x128xf32>
    %68 = arith.subf %67, %66 : vector<1x2x128xf32>
    %69 = arith.mulf %68, %61 : vector<1x2x128xf32>
    %c0_24 = arith.constant 0 : index
    %c0_25 = arith.constant 0 : index
    %c0_26 = arith.constant 0 : index
    %70 = vector.load %arg4[%c0_24, %c0_25, %c0_26] : memref<1x1x1xf32, #tpu.memory_space<vmem>>, vector<1x1x1xf32>
    %71 = vector.shape_cast %69 : vector<1x2x128xf32> to vector<1x1x2x128xf32>
    %cst_27 = arith.constant dense<0.000000e+00> : vector<1xf32>
    %72 = vector.multi_reduction <add>, %71, %cst_27 [1, 2, 3] : vector<1x1x2x128xf32> to vector<1xf32>
    %73 = vector.shape_cast %72 : vector<1xf32> to vector<1x1x1x1xf32>
    %74 = vector.extract %73[0, 0, 0, 0] : f32 from vector<1x1x1x1xf32>
    %75 = vector.broadcast %74 : f32 to vector<1x1x1xf32>
    %76 = arith.addf %70, %75 : vector<1x1x1xf32>
    %c0_28 = arith.constant 0 : index
    %c0_29 = arith.constant 0 : index
    %c0_30 = arith.constant 0 : index
    %77 = vector.load %arg4[%c0_28, %c0_29, %c0_30] : memref<1x1x1xf32, #tpu.memory_space<vmem>>, vector<1x1x1xf32>
    tpu.vector_store %arg4[%c0_28, %c0_29, %c0_30], %76 {strides = array<i32>} : memref<1x1x1xf32, #tpu.memory_space<vmem>>, vector<1x1x1xf32>,
    return
  }
  func.func @transform_0(%arg0: i32, %arg1: i32) -> (i32, i32, i32, i32) {
    %c0_i32 = arith.constant 0 : i32
    %c0_i32_0 = arith.constant 0 : i32
    %c0_i32_1 = arith.constant 0 : i32
    return %arg0, %c0_i32, %arg1, %c0_i32_0 : i32, i32, i32, i32
  }
  func.func @transform_1(%arg0: i32, %arg1: i32) -> (i32, i32, i32, i32) {
    %c0_i32 = arith.constant 0 : i32
    %c0_i32_0 = arith.constant 0 : i32
    %c0_i32_1 = arith.constant 0 : i32
    return %arg0, %c0_i32, %arg1, %c0_i32_0 : i32, i32, i32, i32
  }
  func.func @transform_2(%arg0: i32, %arg1: i32) -> (i32, i32, i32) {
    %c0_i32 = arith.constant 0 : i32
    %c0_i32_0 = arith.constant 0 : i32
    %c0_i32_1 = arith.constant 0 : i32
    return %arg0, %c0_i32, %c0_i32_0 : i32, i32, i32
  }
}

</mosaic_0001>

<bundles_post_ra>
// kernel: tpu_custom_call.1
= control target key start
LH: loop header
LB: loop body
LE: loop exit
PB: predicated region body
PF: predicated region fallthrough
CT: control target
= control target key end

     0   :  { %7 = vsyncpa [#allocation3], 0  ;;  %s792_s0 = inlined_call_operand.hbm [shape: f32[2,4,2,128], index: 0, kind: input, shape index: {}]   ;;  %s793_s1 = inlined_call_operand.hbm [shape: s32[2,1,2,128], index: 1, kind: input, shape index: {}]   ;;  %s794_s2 = inlined_call_operand.vmem [shape: f32[2,1,1], index: 2, kind: output, shape index: {}]  }
   0x1   :  { %9 = vsyncpa [#allocation3 + $0x1], 0 }
   0x2   :  { %10 = vsyncpa [#allocation5], 0 }
   0x3   :  { %12 = vsyncpa [#allocation5 + $0x1], 0  ;;  %s616_s9 = smov 0   ;;  %s618_s10 = smov 0  }
   0x4   :  { %s620_s11 = smov 0   ;;  %s622_s12 = smov 0  }
   0x5   :  { %s624_s13 = smov 0   ;;  %s626_s14 = smov 0  }
   0x6 LB: > { %s388_s15 = sadd.s32 4294967295, %s594_s14   ;;  %s30_s16 = sadd.s32 1, %s590_s13  ;;  %s594_s14 = sphi %s626_s14, %s18_s14   ;;  %s590_s13 = sphi %s624_s13, %s806_s13   ;;  %s586_s12 = sphi %s622_s12, %s805_s12   ;;  %s582_s11 = sphi %s620_s11, %s804_s11   ;;  %s578_s10 = sphi %s618_s10, %s803_s10   ;;  %s574_s9 = sphi %s616_s9, %s802_s9  }
   0x7   : > { %p32_p0 = scmp.ge.s32.totalorder %s30_s16, 2  ;;  %s39_s17 = sadd.s32 1, %s582_s11 }
   0x8   : > { %p46_p1 = scmp.ne.s32.totalorder %s582_s11, %s578_s10  ;;  %p47_p2 = scmp.eq.s32.totalorder %s594_s14, 0 }
   0x9   : > { %s808_s16 = smov (%p32_p0, %s30_s16), 0  ;;  %p52_p4 = scmp.ne.s32.totalorder %s578_s10, %s574_s9 }
   0xa   : > { %p652_p3 = por %p47_p2, %p46_p1  ;;  %s34_s19 = ssub.s32 %s590_s13, %s808_s16 }
   0xb   : > { %p53_p5 = scmp.eq.s32.totalorder %s388_s15, 0  ;;  %p37_p6 = scmp.eq.s32.totalorder %s34_s19, 0 }
   0xc   : > { %p416_p8 = scmp.lt.s32.totalorder %s594_s14, 2  ;;  %s668_s22 = sand.u32 1, %s582_s11  }
   0xd   : > { %p659_p7 = por %p53_p5, %p52_p4  ;;  %s402_s23 = sshll.u32 %s590_s13, 7 }
   0xe   : > { %s665_s21 = scalar_select %p37_p6, %s582_s11, %s39_s17  }
   0xf   : > { %s797_s20 = scalar_select %p659_p7, 1, 0 }
  0x10   : > { %s392_s24 = sshll.u32 %s668_s22, 3  ;;  %s675_s27 = scalar_lea.hbm %s792_s0, %s402_s23 }
  0x11   : > { %s134_s28 = scalar_lea.vmem [#allocation2], %s392_s24  ;;  %p679_p9 = pnand %p416_p8, %p652_p3 }
  0x12   : > { %s142_s29 = sshll.u32 %s134_s28, 4  ;;  %s131_s3 = scalar_lea.sflag [#allocation3], %s668_s22  ;;  %s683_s29 = int_to_ptr.vmem [resolvable:$true] %s142_s29 }
  0x13   : > { %s480_s4 = scalar_lea.hbm %s675_s27, 128  ;;  %p482_p11 = pneg %p679_p9 }
  0x14   : > { %p481_p10 = scmp.ne.s32.totalorder %s675_s27, %s480_s4  ;;  %s485_s7 = scalar_lea.hbm %s792_s0, 256 }
  0x15   : > { %p486_p0 = scmp.lt.u32.totalorder %s675_s27, %s792_s0  ;;  %p487_p1 = scmp.lt.u32.totalorder %s485_s7, %s480_s4 }
  0x16   : > { %p483_p12 = pnand %p482_p11, %p481_p10  ;;  %p489_p3 = scmp.lt.u32.totalorder %s480_s4, %s675_s27 }
  0x17   : > { %p488_p2 = por %p487_p1, %p486_p0 }
  0x18   : > { %p484_p13 = pneg %p483_p12 }
  0x19   : > { %p490_p4 = por %p489_p3, %p488_p2 }
  0x1b   : > { %p491_p5 = pnand %p490_p4, %p484_p13 }
  0x1d   : > { %494 = shalt.err (!%p491_p5)
}
  0x1e   : > { %s495_s15 = scalar_lea.vmem %s683_s29, 128  ;;  %s596_s17 = smov [#allocation2]  }
  0x1f   : > { %p496_p6 = scmp.ne.s32.totalorder %s683_s29, %s495_s15  ;;  %s500_s18 = sshll.u32 %s596_s17, 4  ;;  %s501_s18 = int_to_ptr.vmem [resolvable:$false] %s500_s18 }
  0x20   : > { %s502_s19 = scalar_lea.vmem %s501_s18, 256  ;;  %p503_p12 = scmp.lt.s32.totalorder %s683_s29, %s501_s18 }
  0x21   : > { %p498_p8 = pnand %p496_p6, %p482_p11  ;;  %p504_p0 = scmp.lt.s32.totalorder %s502_s19, %s495_s15 }
  0x23   : > { %p499_p10 = pneg %p498_p8  ;;  %p505_p1 = por %p504_p0, %p503_p12 }
  0x25   : > { %p506_p2 = pnand %p505_p1, %p499_p10 }
  0x27   : > { %509 = shalt.err (!%p506_p2)
}
  0x28   : > { %s597_s23 = smov 32   ;;  %s598_s24 = smov 2  }
  0x29   : > { %412 = dma.hbm_to_vmem [thread:$0]  (!%p679_p9), %s675_s27, 128, %s683_s29, %s131_s3, %s597_s23, %s597_s23, %s598_s24  }
  0x2a   : > { %p397_p13 = scmp.ge.s32.totalorder %s594_s14, 1  ;;  %p169_p3 = scmp.lt.s32.totalorder %s594_s14, 3 }
  0x2b   : > { %s395_s25 = sshll.u32 %s668_s22, 1  ;;  %s396_s28 = sshll.u32 %s590_s13, 5 }
  0x2c   : > { %p716_p4 = pnand %p397_p13, %p169_p3  ;;  %s156_s4 = scalar_lea.vmem [#allocation4], %s395_s25 }
  0x2d   : > { %s164_s5 = sshll.u32 %s156_s4, 4  ;;  %s724_s8 = scalar_lea.hbm %s793_s1, %s396_s28  ;;  %s165_s5 = int_to_ptr.vmem [resolvable:$true] %s164_s5 }
  0x2e   : > { %s799_s26 = scalar_select %p716_p4, 1, 0 }
  0x2f   : > { %s153_s27 = scalar_lea.sflag [#allocation5], %s668_s22  ;;  %s510_s29 = scalar_lea.hbm %s724_s8, 32 }
  0x30   : > { %p511_p5 = scmp.ne.s32.totalorder %s724_s8, %s510_s29  ;;  %s515_s15 = scalar_lea.hbm %s793_s1, 64 }
  0x31   : > { %p516_p10 = scmp.lt.u32.totalorder %s724_s8, %s793_s1  ;;  %p517_p12 = scmp.lt.u32.totalorder %s515_s15, %s510_s29 }
  0x32   : > { %p513_p6 = pnand %p511_p5, %p482_p11  ;;  %p519_p1 = scmp.lt.u32.totalorder %s510_s29, %s724_s8 }
  0x33   : > { %p518_p0 = por %p517_p12, %p516_p10 }
  0x34   : > { %p514_p8 = pneg %p513_p6 }
  0x35   : > { %p520_p2 = por %p519_p1, %p518_p0 }
  0x37   : > { %p521_p13 = pnand %p520_p2, %p514_p8 }
  0x39   : > { %524 = shalt.err (!%p521_p13)
}
  0x3a   : > { %s525_s22 = scalar_lea.vmem %s165_s5, 32  ;;  %s599_s19 = smov [#allocation4]  }
  0x3b   : > { %p526_p3 = scmp.ne.s32.totalorder %s165_s5, %s525_s22  ;;  %s530_s23 = sshll.u32 %s599_s19, 4  ;;  %s531_s23 = int_to_ptr.vmem [resolvable:$false] %s530_s23 }
  0x3c   : > { %s532_s24 = scalar_lea.vmem %s531_s23, 64  ;;  %p533_p7 = scmp.lt.s32.totalorder %s165_s5, %s531_s23 }
  0x3d   : > { %p528_p5 = pnand %p526_p3, %p482_p11  ;;  %p534_p4 = scmp.lt.s32.totalorder %s532_s24, %s525_s22 }
  0x3f   : > { %p529_p6 = pneg %p528_p5  ;;  %p535_p10 = por %p534_p4, %p533_p7 }
  0x41   : > { %p536_p12 = pnand %p535_p10, %p529_p6 }
  0x43   : > { %539 = shalt.err (!%p536_p12)
}
  0x44   : > { %415 = dma.hbm_to_vmem [thread:$0]  (!%p679_p9), %s724_s8, 32, %s165_s5, %s153_s27  }
  0x45   : > { %p800_p8 = scmp.ne.s32.totalorder %s799_s26, 0 }
  0x46   : > { %s175_s25 = sand.u32 (!%p800_p8), 1, %s578_s10   ;;  %p801_p11 = scmp.ne.s32.totalorder (!%p800_p8), %s797_s20, 0 }
  0x47   : > { %173 = sbr.rel (%p800_p8) target bundleno = 345 (0x159), region = 28  ;;  %s398_s28 = sshll.u32 (!%p800_p8), %s175_s25, 3 }
  0x48   : > { %s176_s4 = scalar_lea.sflag (!%p800_p8), [#allocation3], %s175_s25  ;;  %s179_s6 = scalar_lea.vmem (!%p800_p8), [#allocation2], %s398_s28 }
  0x4e   : > { %565 = dma.done.wait (%p801_p11), %s176_s4, 128  }
  0x4f   : > { %567 = vsyncadd (%p801_p11), %s176_s4, 4294967168  ;;  %s399_s7 = sshll.u32 %s175_s25, 1  ;;  %s185_s29 = scalar_lea.sflag [#allocation5], %s175_s25 }
  0x50   : > { %s753_s30 = scalar_lea.vmem [#allocation4], %s399_s7 }
  0x51   : > { %569 = dma.done.wait (%p801_p11), %s185_s29, 32  }
  0x52   : > { %571 = vsyncadd (%p801_p11), %s185_s29, 4294967264  ;;  %vm226_vm0 = vcmask 1041408   ;;  %v221_v0 = vld [vmem:[%s179_s6] sm:$0x3]  ;;  %v222_v1 = vld [vmem:[%s179_s6 + $0x2] sm:$0x3] }
  0x53   : > { %v223_v2 = vld [vmem:[%s179_s6 + $0x4] sm:$0x3]  ;;  %v224_v3 = vld [vmem:[%s179_s6 + $0x6] sm:$0x3]  ;;  %v227_v4 = vsel %vm226_vm0, %v221_v0, -inf  ;;  %v228_v5 = vsel %vm226_vm0, %v222_v1, -inf }
  0x54   : > { %v229_v6 = vsel %vm226_vm0, %v223_v2, -inf  ;;  %v230_v7 = vsel %vm226_vm0, %v224_v3, -inf  ;;  %v231_v8 = vmax.f32 %v227_v4, %v228_v5  ;;  %v225_v25 = vld [vmem:[%s753_s30] sm:$0x3]  ;;  %v600_v36 = vmov 0.0   ;;  %p212_p7 = scmp.lt.s32.totalorder %s586_s12, 1 }
  0x55   : > { %v232_v9 = vmax.f32 %v229_v6, %v230_v7  ;;  %vm253_vm1 = vcmp.eq.s32.totalorder %v225_v25, 0  ;;  %vm256_vm2 = vcmp.eq.s32.totalorder %v225_v25, 1  ;;  %vm259_vm3 = vcmp.eq.s32.totalorder %v225_v25, 2 }
  0x56   : > { %vm262_vm4 = vcmp.eq.s32.totalorder %v225_v25, 3  ;;  %v270_v37 = vsel %vm253_vm1, 0.1, %v600_v36  ;;  %s810_s12 = smov (!%p212_p7, %s586_s12), 1  ;;  %vm219_vm5 = vcmask 0  }
  0x57   : > { %v233_v10 = vmax.f32 %v231_v8, %v232_v9  ;;  %v271_v40 = vsel %vm256_vm2, 0.2, %v270_v37  ;;  %s214_s5 = scalar_lea.vmem %s794_s2, %s810_s12 }
  0x58   : > { %v272_v46 = vsel %vm259_vm3, 0.3, %v271_v40  ;;  %220 = vst.msk [vmem:[%s214_s5] sm:$0x1] %vm219_vm5, %v600_v36 }
  0x59   : > { %v234_v11 = vsub.f32 %v221_v0, %v233_v10  ;;  %v235_v12 = vsub.f32 %v222_v1, %v233_v10  ;;  %v236_v13 = vsub.f32 %v223_v2, %v233_v10  ;;  %v237_v14 = vsub.f32 %v224_v3, %v233_v10 }
  0x5a   : > { %v273_v49 = vsel %vm262_vm4, 0.4, %v272_v46 }
  0x5b   : > { %v238_v15 = vmul.f32 1.442695, %v234_v11  ;;  %v240_v16 = vmul.f32 1.442695, %v235_v12  ;;  %v242_v17 = vmul.f32 1.442695, %v236_v13 }
  0x5c   : > { %v244_v18 = vmul.f32 1.442695, %v237_v14  ;;  %v254_v32 = vsel %vm253_vm1, %v234_v11, 0.0 }
  0x5d   : > { %468 = vpow2.f32 %v238_v15  ;;  %v257_v34 = vsel %vm256_vm2, %v235_v12, %v254_v32 }
  0x5e   : > { %470 = vpow2.f32 %v240_v16  ;;  %v260_v38 = vsel %vm259_vm3, %v236_v13, %v257_v34 }
  0x5f   : > { %472 = vpow2.f32 %v242_v17  ;;  %v263_v43 = vsel %vm262_vm4, %v237_v14, %v260_v38  ;;  %v280_v63 = vld [vmem:[%s214_s5] sm:$0x1] }
  0x60   : > { %474 = vpow2.f32 %v244_v18 }
  0x67   : > { %v469_v19 = vpop.eup %468 }
  0x68   : > { %v471_v20 = vpop.eup %470  ;;  %v246_v21 = vsel %vm226_vm0, %v469_v19, 0.0  ;;  %v255_v31 = vsel %vm253_vm1, %v469_v19, 0.0 }
  0x69   : > { %v473_v22 = vpop.eup %472  ;;  %v247_v23 = vsel %vm226_vm0, %v471_v20, 0.0  ;;  %v258_v33 = vsel %vm256_vm2, %v471_v20, %v255_v31 }
  0x6a   : > { %v475_v24 = vpop.eup %474  ;;  %v248_v26 = vadd.f32 %v247_v23, %v246_v21  ;;  %v249_v27 = vsel %vm226_vm0, %v473_v22, 0.0  ;;  %v261_v35 = vsel %vm259_vm3, %v473_v22, %v258_v33 }
  0x6b   : > { %v251_v28 = vsel %vm226_vm0, %v475_v24, 0.0  ;;  %v264_v39 = vsel %vm262_vm4, %v475_v24, %v261_v35 }
  0x6c   : > { %v250_v29 = vadd.f32 %v249_v27, %v248_v26 }
  0x6e   : > { %v252_v30 = vadd.f32 %v251_v28, %v250_v29 }
  0x70   : > { %476 = vlog2.f32 %v252_v30 }
  0x71   : > { %478 = vrcp.f32 %v252_v30 }
  0x7a   : > { %v477_v41 = vpop.eup %476 }
  0x7b   : > { %v479_v42 = vpop.eup %478  ;;  %v266_v44 = vmul.f32 0.6931472, %v477_v41 }
  0x7c   : > { %v269_v45 = vmul.f32 %v479_v42, %v264_v39 }
  0x7d   : > { %v267_v47 = vsub.f32 %v263_v43, %v266_v44 }
  0x7e   : > { %v275_v48 = vsub.f32 1.0, %v269_v45 }
  0x7f   : > { %v274_v51 = vmul.f32 %v273_v49, %v267_v47 }
  0x80   : > { %v276_v50 = vmax.f32 %v275_v48, 0.0 }
  0x82   : > { %v277_v52 = vmul.f32 %v276_v50, %v276_v50 }
  0x84   : > { %v278_v53 = vsub.f32 0.0, %v277_v52 }
  0x86   : > { %v279_v54 = vmul.f32 %v278_v53, %v274_v51 }
  0x88   : > { %v281_v55 = vsel %vm226_vm0, %v279_v54, 0.0 }
  0x89   : > { %282 = vadd.xlane.f32.xlu0 %v281_v55 }
 0x116   : > { %v283_v56 = vpop.xlane.xlu0 %282 }
 0x117   : > { %v284_v57 = vrot.slane %v283_v56, 4 }
 0x119   : > { %v285_v58 = vadd.f32 %v284_v57, %v283_v56 }
 0x11b   : > { %v286_v59 = vrot.slane %v285_v58, 2 }
 0x11d   : > { %v287_v60 = vadd.f32 %v286_v59, %v285_v58 }
 0x11f   : > { %v288_v61 = vrot.slane %v287_v60, 1 }
 0x121   : > { %v289_v62 = vadd.f32 %v288_v61, %v287_v60 }
 0x123   : > { %403 = vpush %v289_v62 }
 0x154   : > { %s404_s8 = spop %403 }
 0x155   : > { %v291_v0 = vstv %s404_s8 }
 0x156   : > { %v292_v1 = vadd.f32 %v291_v0, %v280_v63 }
 0x158   : > { %294 = vst.msk [vmem:[%s214_s5] sm:$0x1] %vm219_vm5, %v292_v1 }
 0x159 PF: > { %s18_s14 = sadd.s32 1, %s594_s14   ;;  %s802_s9 = smov %s578_s10 }
 0x15a   : > { %p15_p9 = scmp.ge.s32.totalorder %s18_s14, 4   ;;  %s803_s10 = smov %s582_s11 }
 0x15b   : > { %s804_s11 = smov %s665_s21  ;;  %s805_s12 = smov %s590_s13 }
 0x15c   : > { %s806_s13 = smov %s808_s16  ;;  %17 = sbr.rel (!%p15_p9) target bundleno = 6 (0x6), region = 85 }
 0x163   :  { %312 = vsyncpa [#allocation3], 1 }
 0x164   :  { %314 = vsyncpa [#allocation3 + $0x1], 1 }
 0x165   :  { %315 = vsyncpa [#allocation5], 1 }
 0x166   :  { %317 = vsyncpa [#allocation5 + $0x1], 1 }

</bundles_post_ra>
